<compile_context>
chip_gen: v7x
topology: tpu7x:2x2x1
jax: 0.10.0
libtpu: 0.0.40
codegen_flags: <defaults>
</compile_context>

<pallas_src>
import functools
import math

import jax
import jax.numpy as jnp
from jax.experimental import pallas as pl
from jax.experimental.pallas import tpu as pltpu


# Scoped VMEM budget: above the 16/32 MiB defaults, safe on all generations
# (raise toward ~96-112 MiB on v6e with larger tiles; keep below 64 MiB on v7x).
_VMEM_LIMIT_BYTES = 48 * 1024 * 1024


# ----------------------------- in-kernel helpers -----------------------------

def _layernorm_f32(x, eps=1e-6):
    """LayerNorm without affine params, computed in float32."""
    mu = jnp.mean(x, axis=-1, keepdims=True)
    var = jnp.mean((x - mu) ** 2, axis=-1, keepdims=True)
    return (x - mu) * jax.lax.rsqrt(var + eps)


def _gelu_tanh(x):
    """Matches torch.nn.GELU(approximate='tanh')."""
    k = math.sqrt(2.0 / math.pi)
    return 0.5 * x * (1.0 + jnp.tanh(k * (x + 0.044715 * x * x * x)))


def _pick_tile(n, target):
    """Largest divisor of n that is <= target (falls back to n)."""
    if n <= target:
        return n
    for t in range(target, 0, -1):
        if n % t == 0:
            return t
    return n


# --------------------------- kernel 1: LN1 + QKV ------------------------------

def qkv_kernel(x_ref, shift_ref, scale_ref, w_qkv_ref, b_qkv_ref, qkv_ref):
    # x_ref: (1, tn, D); shift/scale: (1, 1, D) float32; w_qkv: (D, 3D)
    x = x_ref[0].astype(jnp.float32)                          # (tn, D), f32 stats
    h = _layernorm_f32(x) * (1.0 + scale_ref[0]) + shift_ref[0]
    h = h.astype(w_qkv_ref.dtype)                             # bf16 MXU path if bf16
    qkv = jnp.dot(h, w_qkv_ref[...], preferred_element_type=jnp.float32)
    qkv = qkv + b_qkv_ref[...].astype(jnp.float32)
    qkv_ref[0] = qkv.astype(qkv_ref.dtype)


# --------------------- kernel 2: flash-style attention ------------------------

def attn_flash_kernel(q_ref, k_ref, v_ref, o_ref, m_sc, l_sc, acc_sc, *, scale):
    # grid: (B*H, q_tiles, kv_tiles); q_ref: (1, tq, hd); k/v_ref: (1, tk, hd)
    kv = pl.program_id(2)

    @pl.when(kv == 0)
    def _():
        m_sc[...] = jnp.full(m_sc.shape, -jnp.inf, dtype=m_sc.dtype)
        l_sc[...] = jnp.zeros(l_sc.shape, dtype=l_sc.dtype)
        acc_sc[...] = jnp.zeros(acc_sc.shape, dtype=acc_sc.dtype)

    q = q_ref[0]                                              # (tq, hd)
    k = k_ref[0]                                              # (tk, hd)
    # Contract last dims directly (no materialized transpose through the XLU).
    s = jax.lax.dot_general(q, k, (((1,), (1,)), ((), ())),
                            preferred_element_type=jnp.float32) * scale  # (tq, tk)

    m_prev = m_sc[...]
    m_new = jnp.maximum(m_prev, jnp.max(s, axis=-1, keepdims=True))
    alpha = jnp.exp(m_prev - m_new)
    p = jnp.exp(s - m_new)                                    # f32 softmax stats
    l_sc[...] = alpha * l_sc[...] + jnp.sum(p, axis=-1, keepdims=True)
    acc_sc[...] = alpha * acc_sc[...] + jnp.dot(
        p.astype(v_ref.dtype), v_ref[0], preferred_element_type=jnp.float32)
    m_sc[...] = m_new

    @pl.when(kv == pl.num_programs(2) - 1)
    def _():
        inv_l = pl.reciprocal(l_sc[...], approx=True)         # EUP slot, ~free
        o_ref[0] = (acc_sc[...] * inv_l).astype(o_ref.dtype)


# ---------------- kernel 3: proj + residual + LN2 + MLP (H-tiled) -------------

def proj_mlp_kernel(x_ref, attn_ref,
                    gate_msa_ref, shift_mlp_ref, scale_mlp_ref, gate_mlp_ref,
                    w_proj_ref, b_proj_ref,
                    w_fc1_ref, b_fc1_ref, w_fc2_ref, b_fc2_ref,
                    o_ref,
                    x1_sc, hmod_sc, acc_sc):
    # grid: (B, token_tiles, hidden_tiles); j (hidden dim of the MLP) is the
    # trailing reduction axis with an f32 accumulator in VMEM scratch.
    j = pl.program_id(2)

    @pl.when(j == 0)
    def _():
        attn = attn_ref[0]                                    # (tn, D)
        a = jnp.dot(attn, w_proj_ref[...], preferred_element_type=jnp.float32)
        a = a + b_proj_ref[...].astype(jnp.float32)
        x1 = x_ref[0].astype(jnp.float32) + gate_msa_ref[0] * a   # residual in f32
        x1_sc[...] = x1
        hmod_sc[...] = (_layernorm_f32(x1) * (1.0 + scale_mlp_ref[0])
                        + shift_mlp_ref[0])
        acc_sc[...] = jnp.zeros(acc_sc.shape, dtype=acc_sc.dtype)

    hmod = hmod_sc[...].astype(w_fc1_ref.dtype)               # (tn, D)
    hid = jnp.dot(hmod, w_fc1_ref[...], preferred_element_type=jnp.float32)
    hid = _gelu_tanh(hid + b_fc1_ref[...].astype(jnp.float32))
    acc_sc[...] += jnp.dot(hid.astype(w_fc2_ref.dtype), w_fc2_ref[...],
                           preferred_element_type=jnp.float32)

    @pl.when(j == pl.num_programs(2) - 1)
    def _():
        mlp_out = acc_sc[...] + b_fc2_ref[...].astype(jnp.float32)
        o_ref[0] = (x1_sc[...] + gate_mlp_ref[0] * mlp_out).astype(o_ref.dtype)


# --------------------------------- wrapper ------------------------------------

def dit_block(x, c, params, num_heads, *,
              token_tile=128, kv_tile=128, hidden_tile=512):
    B, N, D = x.shape
    assert D % num_heads == 0
    hd = D // num_heads
    Hm = params["w_fc1"].shape[1]
    f32 = jnp.float32

    tn = _pick_tile(N, token_tile)      # token tile (QKV and MLP kernels)
    tq = _pick_tile(N, token_tile)      # query tile (attention)
    tk = _pick_tile(N, kv_tile)         # kv tile (attention)
    th = _pick_tile(Hm, hidden_tile)    # MLP hidden tile

    # -- adaLN modulation hoisted to XLA (tiny B x 6D GEMV; keep it in f32) ----
    c32 = c.astype(f32)
    c_silu = (c32 * jax.nn.sigmoid(c32)).astype(c.dtype)
    mod = (jnp.dot(c_silu, params["w_ada"], preferred_element_type=f32)
           + params["b_ada"].astype(f32))                     # (B, 6D) f32
    mod = mod.reshape(B, 6, 1, D)
    shift_msa = mod[:, 0]                                     # each (B, 1, D) f32
    scale_msa = mod[:, 1]
    gate_msa = mod[:, 2]
    shift_mlp = mod[:, 3]
    scale_mlp = mod[:, 4]
    gate_mlp = mod[:, 5]

    # -------------------- kernel 1: LN1 + modulate + QKV ----------------------
    qkv = pl.pallas_call(
        qkv_kernel,
        out_shape=jax.ShapeDtypeStruct((B, N, 3 * D), x.dtype),
        grid=(B, N // tn),
        in_specs=[
            pl.BlockSpec((1, tn, D), lambda b, i: (b, i, 0)),      # x tile
            pl.BlockSpec((1, 1, D), lambda b, i: (b, 0, 0)),       # shift_msa row
            pl.BlockSpec((1, 1, D), lambda b, i: (b, 0, 0)),       # scale_msa row
            pl.BlockSpec((D, 3 * D), lambda b, i: (0, 0)),         # w_qkv (resident)
            pl.BlockSpec((1, 3 * D), lambda b, i: (0, 0)),         # b_qkv
        ],
        out_specs=pl.BlockSpec((1, tn, 3 * D), lambda b, i: (b, i, 0)),
        compiler_params=pltpu.CompilerParams(
            dimension_semantics=("parallel", "parallel"),
            vmem_limit_bytes=_VMEM_LIMIT_BYTES),
    )(x, shift_msa, scale_msa, params["w_qkv"], params["b_qkv"])

    # Layout plumbing in the wrapper: head_dim becomes the lane axis, heads a
    # grid axis (no sub-128-lane head slicing inside the kernel).
    q = qkv[..., 0 * D:1 * D]
    k = qkv[..., 1 * D:2 * D]
    v = qkv[..., 2 * D:3 * D]

    def to_heads(t):
        return (t.reshape(B, N, num_heads, hd)
                 .transpose(0, 2, 1, 3)
                 .reshape(B * num_heads, N, hd))

    qh, kh, vh = to_heads(q), to_heads(k), to_heads(v)

    # ----------------- kernel 2: flash-style multi-head attention -------------
    attn = pl.pallas_call(
        functools.partial(attn_flash_kernel, scale=1.0 / math.sqrt(hd)),
        out_shape=jax.ShapeDtypeStruct((B * num_heads, N, hd), x.dtype),
        grid=(B * num_heads, N // tq, N // tk),
        in_specs=[
            pl.BlockSpec((1, tq, hd), lambda bh, qi, ki: (bh, qi, 0)),
            pl.BlockSpec((1, tk, hd), lambda bh, qi, ki: (bh, ki, 0)),
            pl.BlockSpec((1, tk, hd), lambda bh, qi, ki: (bh, ki, 0)),
        ],
        out_specs=pl.BlockSpec((1, tq, hd), lambda bh, qi, ki: (bh, qi, 0)),
        scratch_shapes=[pltpu.VMEM((tq, 1), jnp.float32),      # running max m
                        pltpu.VMEM((tq, 1), jnp.float32),      # running sum l
                        pltpu.VMEM((tq, hd), jnp.float32)],    # f32 accumulator
        compiler_params=pltpu.CompilerParams(
            dimension_semantics=("parallel", "parallel", "arbitrary"),
            vmem_limit_bytes=_VMEM_LIMIT_BYTES),
    )(qh, kh, vh)

    attn = (attn.reshape(B, num_heads, N, hd)
                .transpose(0, 2, 1, 3)
                .reshape(B, N, D))

    # ------- kernel 3: proj + residual + LN2 + modulate + MLP (H tiled) -------
    out = pl.pallas_call(
        proj_mlp_kernel,
        out_shape=jax.ShapeDtypeStruct((B, N, D), x.dtype),
        grid=(B, N // tn, Hm // th),
        in_specs=[
            pl.BlockSpec((1, tn, D), lambda b, i, j: (b, i, 0)),   # x tile
            pl.BlockSpec((1, tn, D), lambda b, i, j: (b, i, 0)),   # attn tile
            pl.BlockSpec((1, 1, D), lambda b, i, j: (b, 0, 0)),    # gate_msa
            pl.BlockSpec((1, 1, D), lambda b, i, j: (b, 0, 0)),    # shift_mlp
            pl.BlockSpec((1, 1, D), lambda b, i, j: (b, 0, 0)),    # scale_mlp
            pl.BlockSpec((1, 1, D), lambda b, i, j: (b, 0, 0)),    # gate_mlp
            pl.BlockSpec((D, D), lambda b, i, j: (0, 0)),          # w_proj
            pl.BlockSpec((1, D), lambda b, i, j: (0, 0)),          # b_proj
            pl.BlockSpec((D, th), lambda b, i, j: (0, j)),         # w_fc1 slab
            pl.BlockSpec((1, th), lambda b, i, j: (0, j)),         # b_fc1 slab
            pl.BlockSpec((th, D), lambda b, i, j: (j, 0)),         # w_fc2 slab
            pl.BlockSpec((1, D), lambda b, i, j: (0, 0)),          # b_fc2
        ],
        out_specs=pl.BlockSpec((1, tn, D), lambda b, i, j: (b, i, 0)),
        scratch_shapes=[pltpu.VMEM((tn, D), jnp.float32),      # x1 = x + g*attn
                        pltpu.VMEM((tn, D), jnp.float32),      # modulate(LN2(x1))
                        pltpu.VMEM((tn, D), jnp.float32)],     # fc2 accumulator
        compiler_params=pltpu.CompilerParams(
            dimension_semantics=("parallel", "parallel", "arbitrary"),
            vmem_limit_bytes=_VMEM_LIMIT_BYTES),
    )(x, attn, gate_msa, shift_mlp, scale_mlp, gate_mlp,
      params["w_proj"], params["b_proj"],
      params["w_fc1"], params["b_fc1"], params["w_fc2"], params["b_fc2"])

    return out


# ------------------------------ JAX reference ---------------------------------

def dit_block_ref(x, c, params, num_heads):
    B, N, D = x.shape
    hd = D // num_heads

    def ln(t):
        mu = t.mean(-1, keepdims=True)
        var = ((t - mu) ** 2).mean(-1, keepdims=True)
        return (t - mu) / jnp.sqrt(var + 1e-6)

    c_silu = c * jax.nn.sigmoid(c)
    mod = c_silu @ params["w_ada"] + params["b_ada"]
    (shift_msa, scale_msa, gate_msa,
     shift_mlp, scale_mlp, gate_mlp) = jnp.split(mod, 6, axis=-1)

    h = ln(x) * (1 + scale_msa[:, None, :]) + shift_msa[:, None, :]
    qkv = h @ params["w_qkv"] + params["b_qkv"]
    q, k, v = jnp.split(qkv, 3, axis=-1)
    q = q.reshape(B, N, num_heads, hd).transpose(0, 2, 1, 3)
    k = k.reshape(B, N, num_heads, hd).transpose(0, 2, 1, 3)
    v = v.reshape(B, N, num_heads, hd).transpose(0, 2, 1, 3)
    attn = jax.nn.softmax(jnp.einsum("bhnd,bhmd->bhnm", q, k) / math.sqrt(hd), axis=-1)
    out = jnp.einsum("bhnm,bhmd->bhnd", attn, v).transpose(0, 2, 1, 3).reshape(B, N, D)
    out = out @ params["w_proj"] + params["b_proj"]
    x = x + gate_msa[:, None, :] * out

    h = ln(x) * (1 + scale_mlp[:, None, :]) + shift_mlp[:, None, :]
    h = h @ params["w_fc1"] + params["b_fc1"]
    h = _gelu_tanh(h)
    h = h @ params["w_fc2"] + params["b_fc2"]
    return x + gate_mlp[:, None, :] * h


# ----------------------------------- main -------------------------------------

if __name__ == "__main__":
    B, N, D = 2, 8, 32
    num_heads = 4
    mlp_ratio = 4.0
    Hm = int(D * mlp_ratio)

    key = jax.random.PRNGKey(0)
    keys = jax.random.split(key, 14)

    def rnd(k, shape, s=0.05):
        return (s * jax.random.normal(k, shape)).astype(jnp.float32)

    x = rnd(keys[0], (B, N, D), 1.0)
    c = rnd(keys[1], (B, D), 1.0)

    params = {
        "w_ada": rnd(keys[2], (D, 6 * D)),
        "b_ada": rnd(keys[3], (1, 6 * D)),
        "w_qkv": rnd(keys[4], (D, 3 * D)),
        "b_qkv": rnd(keys[5], (1, 3 * D)),
        "w_proj": rnd(keys[6], (D, D)),
        "b_proj": rnd(keys[7], (1, D)),
        "w_fc1": rnd(keys[8], (D, Hm)),
        "b_fc1": rnd(keys[9], (1, Hm)),
        "w_fc2": rnd(keys[10], (Hm, D)),
        "b_fc2": rnd(keys[11], (1, D)),
    }

    fn = jax.jit(functools.partial(dit_block, num_heads=num_heads))

    # float32 storage path (strict check against f32 reference).
    out = jax.block_until_ready(fn(x, c, params))
    ref = dit_block_ref(x, c, params, num_heads)
    assert out.shape == (B, N, D)
    err = float(jnp.max(jnp.abs(out - ref)))
    assert jnp.allclose(out, ref, atol=2e-3, rtol=2e-3), err

    # bfloat16 storage path (f32 stats/accumulation in-kernel; looser check).
    x_bf = x.astype(jnp.bfloat16)
    c_bf = c.astype(jnp.bfloat16)
    params_bf = {k_: v_.astype(jnp.bfloat16) for k_, v_ in params.items()}
    out_bf = jax.block_until_ready(fn(x_bf, c_bf, params_bf))
    assert out_bf.shape == (B, N, D) and out_bf.dtype == jnp.bfloat16
    err_bf = float(jnp.max(jnp.abs(out_bf.astype(jnp.float32) - ref)))
    assert jnp.allclose(out_bf.astype(jnp.float32), ref, atol=6e-2, rtol=6e-2), err_bf

    print("KERNEL_OK")
</pallas_src>

<mosaic_0001>
module attributes {stable_mosaic.version = 11 : i64} {
  func.func @qkv_kernel(%arg0: i32, %arg1: i32, %arg2: memref<1x8x32xf32, #tpu.memory_space<vmem>>, %arg3: memref<1x1x32xf32, #tpu.memory_space<vmem>>, %arg4: memref<1x1x32xf32, #tpu.memory_space<vmem>>, %arg5: memref<32x96xf32, #tpu.memory_space<vmem>>, %arg6: memref<1x96xf32, #tpu.memory_space<vmem>>, %arg7: memref<1x8x96xf32, #tpu.memory_space<vmem>>) attributes {dimension_semantics = [#tpu.dimension_semantics<parallel>, #tpu.dimension_semantics<parallel>], iteration_bounds = array<i64: 2, 1>, scalar_prefetch = 0 : i64, scratch_operands = 0 : i64, tpu.core_type = #tpu.core_type<tc>, window_params = [{transform_indices = @transform_0, window_bounds = array<i64: 1, 8, 32>}, {transform_indices = @transform_1, window_bounds = array<i64: 1, 1, 32>}, {transform_indices = @transform_2, window_bounds = array<i64: 1, 1, 32>}, {pipeline_mode = #tpu.pipeline_mode<synchronous>, transform_indices = @transform_3, window_bounds = array<i64: 32, 96>}, {pipeline_mode = #tpu.pipeline_mode<synchronous>, transform_indices = @transform_4, window_bounds = array<i64: 1, 96>}, {transform_indices = @transform_5, window_bounds = array<i64: 1, 8, 96>}]} {
    %c0 = arith.constant 0 : index
    %c0_0 = arith.constant 0 : index
    %c0_1 = arith.constant 0 : index
    %0 = vector.load %arg2[%c0, %c0_0, %c0_1] : memref<1x8x32xf32, #tpu.memory_space<vmem>>, vector<1x8x32xf32>
    %1 = vector.shape_cast %0 : vector<1x8x32xf32> to vector<8x32xf32>
    %cst = arith.constant dense<0.000000e+00> : vector<8xf32>
    %2 = vector.multi_reduction <add>, %1, %cst [1] : vector<8x32xf32> to vector<8xf32>
    %3 = vector.shape_cast %2 : vector<8xf32> to vector<8x1xf32>
    %cst_2 = arith.constant 3.200000e+01 : f32
    %4 = vector.broadcast %cst_2 : f32 to vector<8x1xf32>
    %5 = arith.divf %3, %4 : vector<8x1xf32>
    %6 = vector.broadcast %5 : vector<8x1xf32> to vector<8x32xf32>
    %7 = arith.subf %1, %6 : vector<8x32xf32>
    %8 = arith.mulf %7, %7 : vector<8x32xf32>
    %cst_3 = arith.constant dense<0.000000e+00> : vector<8xf32>
    %9 = vector.multi_reduction <add>, %8, %cst_3 [1] : vector<8x32xf32> to vector<8xf32>
    %10 = vector.shape_cast %9 : vector<8xf32> to vector<8x1xf32>
    %cst_4 = arith.constant 3.200000e+01 : f32
    %11 = vector.broadcast %cst_4 : f32 to vector<8x1xf32>
    %12 = arith.divf %10, %11 : vector<8x1xf32>
    %13 = vector.broadcast %5 : vector<8x1xf32> to vector<8x32xf32>
    %14 = arith.subf %1, %13 : vector<8x32xf32>
    %cst_5 = arith.constant 9.99999997E-7 : f32
    %15 = vector.broadcast %cst_5 : f32 to vector<8x1xf32>
    %16 = arith.addf %12, %15 : vector<8x1xf32>
    %17 = math.rsqrt %16 : vector<8x1xf32>
    %18 = vector.broadcast %17 : vector<8x1xf32> to vector<8x32xf32>
    %19 = arith.mulf %14, %18 : vector<8x32xf32>
    %c0_6 = arith.constant 0 : index
    %c0_7 = arith.constant 0 : index
    %c0_8 = arith.constant 0 : index
    %20 = vector.load %arg4[%c0_6, %c0_7, %c0_8] : memref<1x1x32xf32, #tpu.memory_space<vmem>>, vector<1x1x32xf32>
    %21 = vector.shape_cast %20 : vector<1x1x32xf32> to vector<1x32xf32>
    %cst_9 = arith.constant 1.000000e+00 : f32
    %22 = vector.broadcast %cst_9 : f32 to vector<1x32xf32>
    %23 = arith.addf %22, %21 : vector<1x32xf32>
    %24 = vector.broadcast %23 : vector<1x32xf32> to vector<8x32xf32>
    %25 = arith.mulf %19, %24 : vector<8x32xf32>
    %c0_10 = arith.constant 0 : index
    %c0_11 = arith.constant 0 : index
    %c0_12 = arith.constant 0 : index
    %26 = vector.load %arg3[%c0_10, %c0_11, %c0_12] : memref<1x1x32xf32, #tpu.memory_space<vmem>>, vector<1x1x32xf32>
    %27 = vector.shape_cast %26 : vector<1x1x32xf32> to vector<1x32xf32>
    %28 = vector.broadcast %27 : vector<1x32xf32> to vector<8x32xf32>
    %29 = arith.addf %25, %28 : vector<8x32xf32>
    %c0_13 = arith.constant 0 : index
    %c0_14 = arith.constant 0 : index
    %30 = vector.load %arg5[%c0_13, %c0_14] : memref<32x96xf32, #tpu.memory_space<vmem>>, vector<32x96xf32>
    %cst_15 = arith.constant dense<0.000000e+00> : vector<8x96xf32>
    %31 = tpu.matmul %29, %30, %cst_15 {dimension_numbers = #tpu.dot_dimension_numbers<[1], [0], [0], [1], [0, 0, 1, 1], [], []>} : vector<8x32xf32>, vector<32x96xf32>, vector<8x96xf32> -> vector<8x96xf32>
    %c0_16 = arith.constant 0 : index
    %c0_17 = arith.constant 0 : index
    %32 = vector.load %arg6[%c0_16, %c0_17] : memref<1x96xf32, #tpu.memory_space<vmem>>, vector<1x96xf32>
    %33 = vector.broadcast %32 : vector<1x96xf32> to vector<8x96xf32>
    %34 = arith.addf %31, %33 : vector<8x96xf32>
    %c0_18 = arith.constant 0 : index
    %c0_19 = arith.constant 0 : index
    %c0_20 = arith.constant 0 : index
    %35 = vector.load %arg7[%c0_18, %c0_19, %c0_20] : memref<1x8x96xf32, #tpu.memory_space<vmem>>, vector<1x8x96xf32>
    %36 = vector.shape_cast %35 : vector<1x8x96xf32> to vector<8x96xf32>
    %37 = vector.shape_cast %34 : vector<8x96xf32> to vector<1x8x96xf32>
    tpu.vector_store %arg7[%c0_18, %c0_19, %c0_20], %37 {strides = array<i32>} : memref<1x8x96xf32, #tpu.memory_space<vmem>>, vector<1x8x96xf32>,
    return
  }
  func.func @transform_0(%arg0: i32, %arg1: i32) -> (i32, i32, i32) {
    %c0_i32 = arith.constant 0 : i32
    %c0_i32_0 = arith.constant 0 : i32
    return %arg0, %arg1, %c0_i32 : i32, i32, i32
  }
  func.func @transform_1(%arg0: i32, %arg1: i32) -> (i32, i32, i32) {
    %c0_i32 = arith.constant 0 : i32
    %c0_i32_0 = arith.constant 0 : i32
    %c0_i32_1 = arith.constant 0 : i32
    return %arg0, %c0_i32, %c0_i32_0 : i32, i32, i32
  }
  func.func @transform_2(%arg0: i32, %arg1: i32) -> (i32, i32, i32) {
    %c0_i32 = arith.constant 0 : i32
    %c0_i32_0 = arith.constant 0 : i32
    %c0_i32_1 = arith.constant 0 : i32
    return %arg0, %c0_i32, %c0_i32_0 : i32, i32, i32
  }
  func.func @transform_3(%arg0: i32, %arg1: i32) -> (i32, i32) {
    %c0_i32 = arith.constant 0 : i32
    %c0_i32_0 = arith.constant 0 : i32
    %c0_i32_1 = arith.constant 0 : i32
    return %c0_i32, %c0_i32_0 : i32, i32
  }
  func.func @transform_4(%arg0: i32, %arg1: i32) -> (i32, i32) {
    %c0_i32 = arith.constant 0 : i32
    %c0_i32_0 = arith.constant 0 : i32
    %c0_i32_1 = arith.constant 0 : i32
    return %c0_i32, %c0_i32_0 : i32, i32
  }
  func.func @transform_5(%arg0: i32, %arg1: i32) -> (i32, i32, i32) {
    %c0_i32 = arith.constant 0 : i32
    %c0_i32_0 = arith.constant 0 : i32
    return %arg0, %arg1, %c0_i32 : i32, i32, i32
  }
}

module attributes {stable_mosaic.version = 11 : i64} {
  func.func @attn_flash_kernel(%arg0: i32, %arg1: i32, %arg2: i32, %arg3: memref<1x8x8xf32, #tpu.memory_space<vmem>>, %arg4: memref<1x8x8xf32, #tpu.memory_space<vmem>>, %arg5: memref<1x8x8xf32, #tpu.memory_space<vmem>>, %arg6: memref<1x8x8xf32, #tpu.memory_space<vmem>>, %arg7: memref<8x1xf32, #tpu.memory_space<vmem>>, %arg8: memref<8x1xf32, #tpu.memory_space<vmem>>, %arg9: memref<8x8xf32, #tpu.memory_space<vmem>>) attributes {dimension_semantics = [#tpu.dimension_semantics<parallel>, #tpu.dimension_semantics<parallel>, #tpu.dimension_semantics<arbitrary>], iteration_bounds = array<i64: 8, 1, 1>, scalar_prefetch = 0 : i64, scratch_operands = 3 : i64, tpu.core_type = #tpu.core_type<tc>, window_params = [{transform_indices = @transform_0, window_bounds = array<i64: 1, 8, 8>}, {transform_indices = @transform_1, window_bounds = array<i64: 1, 8, 8>}, {transform_indices = @transform_2, window_bounds = array<i64: 1, 8, 8>}, {transform_indices = @transform_3, window_bounds = array<i64: 1, 8, 8>}]} {
    %c0_i32 = arith.constant 0 : i32
    %0 = arith.cmpi eq, %arg2, %c0_i32 : i32
    %1 = arith.extui %0 : i1 to i32
    %c0_i32_0 = arith.constant 0 : i32
    %2 = arith.cmpi ne, %1, %c0_i32_0 : i32
    scf.if %2 {
      %cst_27 = arith.constant 0xFF800000 : f32
      %37 = vector.broadcast %cst_27 : f32 to vector<8x1xf32>
      %c0_28 = arith.constant 0 : index
      %c0_29 = arith.constant 0 : index
      %38 = vector.load %arg7[%c0_28, %c0_29] : memref<8x1xf32, #tpu.memory_space<vmem>>, vector<8x1xf32>
      tpu.vector_store %arg7[%c0_28, %c0_29], %37 {strides = array<i32>} : memref<8x1xf32, #tpu.memory_space<vmem>>, vector<8x1xf32>,
      %cst_30 = arith.constant 0.000000e+00 : f32
      %39 = vector.broadcast %cst_30 : f32 to vector<8x1xf32>
      %c0_31 = arith.constant 0 : index
      %c0_32 = arith.constant 0 : index
      %40 = vector.load %arg8[%c0_31, %c0_32] : memref<8x1xf32, #tpu.memory_space<vmem>>, vector<8x1xf32>
      tpu.vector_store %arg8[%c0_31, %c0_32], %39 {strides = array<i32>} : memref<8x1xf32, #tpu.memory_space<vmem>>, vector<8x1xf32>,
      %cst_33 = arith.constant 0.000000e+00 : f32
      %41 = vector.broadcast %cst_33 : f32 to vector<8x8xf32>
      %c0_34 = arith.constant 0 : index
      %c0_35 = arith.constant 0 : index
      %42 = vector.load %arg9[%c0_34, %c0_35] : memref<8x8xf32, #tpu.memory_space<vmem>>, vector<8x8xf32>
      tpu.vector_store %arg9[%c0_34, %c0_35], %41 {strides = array<i32>} : memref<8x8xf32, #tpu.memory_space<vmem>>, vector<8x8xf32>,
    } else {
    }
    %c0 = arith.constant 0 : index
    %c0_1 = arith.constant 0 : index
    %c0_2 = arith.constant 0 : index
    %3 = vector.load %arg3[%c0, %c0_1, %c0_2] : memref<1x8x8xf32, #tpu.memory_space<vmem>>, vector<1x8x8xf32>
    %4 = vector.shape_cast %3 : vector<1x8x8xf32> to vector<8x8xf32>
    %c0_3 = arith.constant 0 : index
    %c0_4 = arith.constant 0 : index
    %c0_5 = arith.constant 0 : index
    %5 = vector.load %arg4[%c0_3, %c0_4, %c0_5] : memref<1x8x8xf32, #tpu.memory_space<vmem>>, vector<1x8x8xf32>
    %6 = vector.shape_cast %5 : vector<1x8x8xf32> to vector<8x8xf32>
    %cst = arith.constant dense<0.000000e+00> : vector<8x8xf32>
    %7 = tpu.matmul %4, %6, %cst {dimension_numbers = #tpu.dot_dimension_numbers<[1], [1], [0], [0], [0, 0, 1, 0], [], []>} : vector<8x8xf32>, vector<8x8xf32>, vector<8x8xf32> -> vector<8x8xf32>
    %cst_6 = arith.constant 0.353553385 : f32
    %8 = vector.broadcast %cst_6 : f32 to vector<8x8xf32>
    %9 = arith.mulf %7, %8 : vector<8x8xf32>
    %c0_7 = arith.constant 0 : index
    %c0_8 = arith.constant 0 : index
    %10 = vector.load %arg7[%c0_7, %c0_8] : memref<8x1xf32, #tpu.memory_space<vmem>>, vector<8x1xf32>
    %cst_9 = arith.constant dense<0xFF800000> : vector<8xf32>
    %11 = vector.multi_reduction <maximumf>, %9, %cst_9 [1] : vector<8x8xf32> to vector<8xf32>
    %12 = vector.shape_cast %11 : vector<8xf32> to vector<8x1xf32>
    %13 = arith.maximumf %10, %12 : vector<8x1xf32>
    %14 = arith.subf %10, %13 : vector<8x1xf32>
    %15 = math.exp %14 : vector<8x1xf32>
    %16 = vector.broadcast %13 : vector<8x1xf32> to vector<8x8xf32>
    %17 = arith.subf %9, %16 : vector<8x8xf32>
    %18 = math.exp %17 : vector<8x8xf32>
    %c0_10 = arith.constant 0 : index
    %c0_11 = arith.constant 0 : index
    %19 = vector.load %arg8[%c0_10, %c0_11] : memref<8x1xf32, #tpu.memory_space<vmem>>, vector<8x1xf32>
    %20 = arith.mulf %15, %19 : vector<8x1xf32>
    %cst_12 = arith.constant dense<0.000000e+00> : vector<8xf32>
    %21 = vector.multi_reduction <add>, %18, %cst_12 [1] : vector<8x8xf32> to vector<8xf32>
    %22 = vector.shape_cast %21 : vector<8xf32> to vector<8x1xf32>
    %23 = arith.addf %20, %22 : vector<8x1xf32>
    %c0_13 = arith.constant 0 : index
    %c0_14 = arith.constant 0 : index
    %24 = vector.load %arg8[%c0_13, %c0_14] : memref<8x1xf32, #tpu.memory_space<vmem>>, vector<8x1xf32>
    tpu.vector_store %arg8[%c0_13, %c0_14], %23 {strides = array<i32>} : memref<8x1xf32, #tpu.memory_space<vmem>>, vector<8x1xf32>,
    %c0_15 = arith.constant 0 : index
    %c0_16 = arith.constant 0 : index
    %25 = vector.load %arg9[%c0_15, %c0_16] : memref<8x8xf32, #tpu.memory_space<vmem>>, vector<8x8xf32>
    %26 = vector.broadcast %15 : vector<8x1xf32> to vector<8x8xf32>
    %27 = arith.mulf %26, %25 : vector<8x8xf32>
    %c0_17 = arith.constant 0 : index
    %c0_18 = arith.constant 0 : index
    %c0_19 = arith.constant 0 : index
    %28 = vector.load %arg5[%c0_17, %c0_18, %c0_19] : memref<1x8x8xf32, #tpu.memory_space<vmem>>, vector<1x8x8xf32>
    %29 = vector.shape_cast %28 : vector<1x8x8xf32> to vector<8x8xf32>
    %cst_20 = arith.constant dense<0.000000e+00> : vector<8x8xf32>
    %30 = tpu.matmul %18, %29, %cst_20 {dimension_numbers = #tpu.dot_dimension_numbers<[1], [0], [0], [1], [0, 0, 1, 1], [], []>} : vector<8x8xf32>, vector<8x8xf32>, vector<8x8xf32> -> vector<8x8xf32>
    %31 = arith.addf %27, %30 : vector<8x8xf32>
    %c0_21 = arith.constant 0 : index
    %c0_22 = arith.constant 0 : index
    %32 = vector.load %arg9[%c0_21, %c0_22] : memref<8x8xf32, #tpu.memory_space<vmem>>, vector<8x8xf32>
    tpu.vector_store %arg9[%c0_21, %c0_22], %31 {strides = array<i32>} : memref<8x8xf32, #tpu.memory_space<vmem>>, vector<8x8xf32>,
    %c0_23 = arith.constant 0 : index
    %c0_24 = arith.constant 0 : index
    %33 = vector.load %arg7[%c0_23, %c0_24] : memref<8x1xf32, #tpu.memory_space<vmem>>, vector<8x1xf32>
    tpu.vector_store %arg7[%c0_23, %c0_24], %13 {strides = array<i32>} : memref<8x1xf32, #tpu.memory_space<vmem>>, vector<8x1xf32>,
    %c0_i32_25 = arith.constant 0 : i32
    %34 = arith.cmpi eq, %arg2, %c0_i32_25 : i32
    %35 = arith.extui %34 : i1 to i32
    %c0_i32_26 = arith.constant 0 : i32
    %36 = arith.cmpi ne, %35, %c0_i32_26 : i32
    scf.if %36 {
      %c0_27 = arith.constant 0 : index
      %c0_28 = arith.constant 0 : index
      %37 = vector.load %arg8[%c0_27, %c0_28] : memref<8x1xf32, #tpu.memory_space<vmem>>, vector<8x1xf32>
      %38 = tpu.reciprocal %37 {approx = true} : vector<8x1xf32> -> vector<8x1xf32>
      %c0_29 = arith.constant 0 : index
      %c0_30 = arith.constant 0 : index
      %39 = vector.load %arg9[%c0_29, %c0_30] : memref<8x8xf32, #tpu.memory_space<vmem>>, vector<8x8xf32>
      %40 = vector.broadcast %38 : vector<8x1xf32> to vector<8x8xf32>
      %41 = arith.mulf %39, %40 : vector<8x8xf32>
      %c0_31 = arith.constant 0 : index
      %c0_32 = arith.constant 0 : index
      %c0_33 = arith.constant 0 : index
      %42 = vector.load %arg6[%c0_31, %c0_32, %c0_33] : memref<1x8x8xf32, #tpu.memory_space<vmem>>, vector<1x8x8xf32>
      %43 = vector.shape_cast %42 : vector<1x8x8xf32> to vector<8x8xf32>
      %44 = vector.shape_cast %41 : vector<8x8xf32> to vector<1x8x8xf32>
      tpu.vector_store %arg6[%c0_31, %c0_32, %c0_33], %44 {strides = array<i32>} : memref<1x8x8xf32, #tpu.memory_space<vmem>>, vector<1x8x8xf32>,
    } else {
    }
    return
  }
  func.func @transform_0(%arg0: i32, %arg1: i32, %arg2: i32) -> (i32, i32, i32) {
    %c0_i32 = arith.constant 0 : i32
    %c0_i32_0 = arith.constant 0 : i32
    return %arg0, %arg1, %c0_i32 : i32, i32, i32
  }
  func.func @transform_1(%arg0: i32, %arg1: i32, %arg2: i32) -> (i32, i32, i32) {
    %c0_i32 = arith.constant 0 : i32
    %c0_i32_0 = arith.constant 0 : i32
    return %arg0, %arg2, %c0_i32 : i32, i32, i32
  }
  func.func @transform_2(%arg0: i32, %arg1: i32, %arg2: i32) -> (i32, i32, i32) {
    %c0_i32 = arith.constant 0 : i32
    %c0_i32_0 = arith.constant 0 : i32
    return %arg0, %arg2, %c0_i32 : i32, i32, i32
  }
  func.func @transform_3(%arg0: i32, %arg1: i32, %arg2: i32) -> (i32, i32, i32) {
    %c0_i32 = arith.constant 0 : i32
    %c0_i32_0 = arith.constant 0 : i32
    return %arg0, %arg1, %c0_i32 : i32, i32, i32
  }
}

module attributes {stable_mosaic.version = 11 : i64} {
  func.func @proj_mlp_kernel(%arg0: i32, %arg1: i32, %arg2: i32, %arg3: memref<1x8x32xf32, #tpu.memory_space<vmem>>, %arg4: memref<1x8x32xf32, #tpu.memory_space<vmem>>, %arg5: memref<1x1x32xf32, #tpu.memory_space<vmem>>, %arg6: memref<1x1x32xf32, #tpu.memory_space<vmem>>, %arg7: memref<1x1x32xf32, #tpu.memory_space<vmem>>, %arg8: memref<1x1x32xf32, #tpu.memory_space<vmem>>, %arg9: memref<32x32xf32, #tpu.memory_space<vmem>>, %arg10: memref<1x32xf32, #tpu.memory_space<vmem>>, %arg11: memref<32x128xf32, #tpu.memory_space<vmem>>, %arg12: memref<1x128xf32, #tpu.memory_space<vmem>>, %arg13: memref<128x32xf32, #tpu.memory_space<vmem>>, %arg14: memref<1x32xf32, #tpu.memory_space<vmem>>, %arg15: memref<1x8x32xf32, #tpu.memory_space<vmem>>, %arg16: memref<8x32xf32, #tpu.memory_space<vmem>>, %arg17: memref<8x32xf32, #tpu.memory_space<vmem>>, %arg18: memref<8x32xf32, #tpu.memory_space<vmem>>) attributes {dimension_semantics = [#tpu.dimension_semantics<parallel>, #tpu.dimension_semantics<parallel>, #tpu.dimension_semantics<arbitrary>], iteration_bounds = array<i64: 2, 1, 1>, scalar_prefetch = 0 : i64, scratch_operands = 3 : i64, tpu.core_type = #tpu.core_type<tc>, window_params = [{transform_indices = @transform_0, window_bounds = array<i64: 1, 8, 32>}, {transform_indices = @transform_1, window_bounds = array<i64: 1, 8, 32>}, {transform_indices = @transform_2, window_bounds = array<i64: 1, 1, 32>}, {transform_indices = @transform_3, window_bounds = array<i64: 1, 1, 32>}, {transform_indices = @transform_4, window_bounds = array<i64: 1, 1, 32>}, {transform_indices = @transform_5, window_bounds = array<i64: 1, 1, 32>}, {pipeline_mode = #tpu.pipeline_mode<synchronous>, transform_indices = @transform_6, window_bounds = array<i64: 32, 32>}, {pipeline_mode = #tpu.pipeline_mode<synchronous>, transform_indices = @transform_7, window_bounds = array<i64: 1, 32>}, {transform_indices = @transform_8, window_bounds = array<i64: 32, 128>}, {transform_indices = @transform_9, window_bounds = array<i64: 1, 128>}, {transform_indices = @transform_10, window_bounds = array<i64: 128, 32>}, {pipeline_mode = #tpu.pipeline_mode<synchronous>, transform_indices = @transform_11, window_bounds = array<i64: 1, 32>}, {transform_indices = @transform_12, window_bounds = array<i64: 1, 8, 32>}]} {
    %c0_i32 = arith.constant 0 : i32
    %0 = arith.cmpi eq, %arg2, %c0_i32 : i32
    %1 = arith.extui %0 : i1 to i32
    %c0_i32_0 = arith.constant 0 : i32
    %2 = arith.cmpi ne, %1, %c0_i32_0 : i32
    scf.if %2 {
      %c0_19 = arith.constant 0 : index
      %c0_20 = arith.constant 0 : index
      %c0_21 = arith.constant 0 : index
      %30 = vector.load %arg4[%c0_19, %c0_20, %c0_21] : memref<1x8x32xf32, #tpu.memory_space<vmem>>, vector<1x8x32xf32>
      %31 = vector.shape_cast %30 : vector<1x8x32xf32> to vector<8x32xf32>
      %c0_22 = arith.constant 0 : index
      %c0_23 = arith.constant 0 : index
      %32 = vector.load %arg9[%c0_22, %c0_23] : memref<32x32xf32, #tpu.memory_space<vmem>>, vector<32x32xf32>
      %cst_24 = arith.constant dense<0.000000e+00> : vector<8x32xf32>
      %33 = tpu.matmul %31, %32, %cst_24 {dimension_numbers = #tpu.dot_dimension_numbers<[1], [0], [0], [1], [0, 0, 1, 1], [], []>} : vector<8x32xf32>, vector<32x32xf32>, vector<8x32xf32> -> vector<8x32xf32>
      %c0_25 = arith.constant 0 : index
      %c0_26 = arith.constant 0 : index
      %34 = vector.load %arg10[%c0_25, %c0_26] : memref<1x32xf32, #tpu.memory_space<vmem>>, vector<1x32xf32>
      %35 = vector.broadcast %34 : vector<1x32xf32> to vector<8x32xf32>
      %36 = arith.addf %33, %35 : vector<8x32xf32>
      %c0_27 = arith.constant 0 : index
      %c0_28 = arith.constant 0 : index
      %c0_29 = arith.constant 0 : index
      %37 = vector.load %arg3[%c0_27, %c0_28, %c0_29] : memref<1x8x32xf32, #tpu.memory_space<vmem>>, vector<1x8x32xf32>
      %38 = vector.shape_cast %37 : vector<1x8x32xf32> to vector<8x32xf32>
      %c0_30 = arith.constant 0 : index
      %c0_31 = arith.constant 0 : index
      %c0_32 = arith.constant 0 : index
      %39 = vector.load %arg5[%c0_30, %c0_31, %c0_32] : memref<1x1x32xf32, #tpu.memory_space<vmem>>, vector<1x1x32xf32>
      %40 = vector.shape_cast %39 : vector<1x1x32xf32> to vector<1x32xf32>
      %41 = vector.broadcast %40 : vector<1x32xf32> to vector<8x32xf32>
      %42 = arith.mulf %41, %36 : vector<8x32xf32>
      %43 = arith.addf %38, %42 : vector<8x32xf32>
      %c0_33 = arith.constant 0 : index
      %c0_34 = arith.constant 0 : index
      %44 = vector.load %arg16[%c0_33, %c0_34] : memref<8x32xf32, #tpu.memory_space<vmem>>, vector<8x32xf32>
      tpu.vector_store %arg16[%c0_33, %c0_34], %43 {strides = array<i32>} : memref<8x32xf32, #tpu.memory_space<vmem>>, vector<8x32xf32>,
      %cst_35 = arith.constant dense<0.000000e+00> : vector<8xf32>
      %45 = vector.multi_reduction <add>, %43, %cst_35 [1] : vector<8x32xf32> to vector<8xf32>
      %46 = vector.shape_cast %45 : vector<8xf32> to vector<8x1xf32>
      %cst_36 = arith.constant 3.200000e+01 : f32
      %47 = vector.broadcast %cst_36 : f32 to vector<8x1xf32>
      %48 = arith.divf %46, %47 : vector<8x1xf32>
      %49 = vector.broadcast %48 : vector<8x1xf32> to vector<8x32xf32>
      %50 = arith.subf %43, %49 : vector<8x32xf32>
      %51 = arith.mulf %50, %50 : vector<8x32xf32>
      %cst_37 = arith.constant dense<0.000000e+00> : vector<8xf32>
      %52 = vector.multi_reduction <add>, %51, %cst_37 [1] : vector<8x32xf32> to vector<8xf32>
      %53 = vector.shape_cast %52 : vector<8xf32> to vector<8x1xf32>
      %cst_38 = arith.constant 3.200000e+01 : f32
      %54 = vector.broadcast %cst_38 : f32 to vector<8x1xf32>
      %55 = arith.divf %53, %54 : vector<8x1xf32>
      %56 = vector.broadcast %48 : vector<8x1xf32> to vector<8x32xf32>
      %57 = arith.subf %43, %56 : vector<8x32xf32>
      %cst_39 = arith.constant 9.99999997E-7 : f32
      %58 = vector.broadcast %cst_39 : f32 to vector<8x1xf32>
      %59 = arith.addf %55, %58 : vector<8x1xf32>
      %60 = math.rsqrt %59 : vector<8x1xf32>
      %61 = vector.broadcast %60 : vector<8x1xf32> to vector<8x32xf32>
      %62 = arith.mulf %57, %61 : vector<8x32xf32>
      %c0_40 = arith.constant 0 : index
      %c0_41 = arith.constant 0 : index
      %c0_42 = arith.constant 0 : index
      %63 = vector.load %arg7[%c0_40, %c0_41, %c0_42] : memref<1x1x32xf32, #tpu.memory_space<vmem>>, vector<1x1x32xf32>
      %64 = vector.shape_cast %63 : vector<1x1x32xf32> to vector<1x32xf32>
      %cst_43 = arith.constant 1.000000e+00 : f32
      %65 = vector.broadcast %cst_43 : f32 to vector<1x32xf32>
      %66 = arith.addf %65, %64 : vector<1x32xf32>
      %67 = vector.broadcast %66 : vector<1x32xf32> to vector<8x32xf32>
      %68 = arith.mulf %62, %67 : vector<8x32xf32>
      %c0_44 = arith.constant 0 : index
      %c0_45 = arith.constant 0 : index
      %c0_46 = arith.constant 0 : index
      %69 = vector.load %arg6[%c0_44, %c0_45, %c0_46] : memref<1x1x32xf32, #tpu.memory_space<vmem>>, vector<1x1x32xf32>
      %70 = vector.shape_cast %69 : vector<1x1x32xf32> to vector<1x32xf32>
      %71 = vector.broadcast %70 : vector<1x32xf32> to vector<8x32xf32>
      %72 = arith.addf %68, %71 : vector<8x32xf32>
      %c0_47 = arith.constant 0 : index
      %c0_48 = arith.constant 0 : index
      %73 = vector.load %arg17[%c0_47, %c0_48] : memref<8x32xf32, #tpu.memory_space<vmem>>, vector<8x32xf32>
      tpu.vector_store %arg17[%c0_47, %c0_48], %72 {strides = array<i32>} : memref<8x32xf32, #tpu.memory_space<vmem>>, vector<8x32xf32>,
      %cst_49 = arith.constant 0.000000e+00 : f32
      %74 = vector.broadcast %cst_49 : f32 to vector<8x32xf32>
      %c0_50 = arith.constant 0 : index
      %c0_51 = arith.constant 0 : index
      %75 = vector.load %arg18[%c0_50, %c0_51] : memref<8x32xf32, #tpu.memory_space<vmem>>, vector<8x32xf32>
      tpu.vector_store %arg18[%c0_50, %c0_51], %74 {strides = array<i32>} : memref<8x32xf32, #tpu.memory_space<vmem>>, vector<8x32xf32>,
    } else {
    }
    %c0 = arith.constant 0 : index
    %c0_1 = arith.constant 0 : index
    %3 = vector.load %arg17[%c0, %c0_1] : memref<8x32xf32, #tpu.memory_space<vmem>>, vector<8x32xf32>
    %c0_2 = arith.constant 0 : index
    %c0_3 = arith.constant 0 : index
    %4 = vector.load %arg11[%c0_2, %c0_3] : memref<32x128xf32, #tpu.memory_space<vmem>>, vector<32x128xf32>
    %cst = arith.constant dense<0.000000e+00> : vector<8x128xf32>
    %5 = tpu.matmul %3, %4, %cst {dimension_numbers = #tpu.dot_dimension_numbers<[1], [0], [0], [1], [0, 0, 1, 1], [], []>} : vector<8x32xf32>, vector<32x128xf32>, vector<8x128xf32> -> vector<8x128xf32>
    %c0_4 = arith.constant 0 : index
    %c0_5 = arith.constant 0 : index
    %6 = vector.load %arg12[%c0_4, %c0_5] : memref<1x128xf32, #tpu.memory_space<vmem>>, vector<1x128xf32>
    %7 = vector.broadcast %6 : vector<1x128xf32> to vector<8x128xf32>
    %8 = arith.addf %5, %7 : vector<8x128xf32>
    %cst_6 = arith.constant 5.000000e-01 : f32
    %9 = vector.broadcast %cst_6 : f32 to vector<8x128xf32>
    %10 = arith.mulf %9, %8 : vector<8x128xf32>
    %cst_7 = arith.constant 4.471500e-02 : f32
    %11 = vector.broadcast %cst_7 : f32 to vector<8x128xf32>
    %12 = arith.mulf %11, %8 : vector<8x128xf32>
    %13 = arith.mulf %12, %8 : vector<8x128xf32>
    %14 = arith.mulf %13, %8 : vector<8x128xf32>
    %15 = arith.addf %8, %14 : vector<8x128xf32>
    %cst_8 = arith.constant 0.797884583 : f32
    %16 = vector.broadcast %cst_8 : f32 to vector<8x128xf32>
    %17 = arith.mulf %16, %15 : vector<8x128xf32>
    %18 = math.tanh %17 : vector<8x128xf32>
    %cst_9 = arith.constant 1.000000e+00 : f32
    %19 = vector.broadcast %cst_9 : f32 to vector<8x128xf32>
    %20 = arith.addf %19, %18 : vector<8x128xf32>
    %21 = arith.mulf %10, %20 : vector<8x128xf32>
    %c0_10 = arith.constant 0 : index
    %c0_11 = arith.constant 0 : index
    %22 = vector.load %arg18[%c0_10, %c0_11] : memref<8x32xf32, #tpu.memory_space<vmem>>, vector<8x32xf32>
    %c0_12 = arith.constant 0 : index
    %c0_13 = arith.constant 0 : index
    %23 = vector.load %arg13[%c0_12, %c0_13] : memref<128x32xf32, #tpu.memory_space<vmem>>, vector<128x32xf32>
    %cst_14 = arith.constant dense<0.000000e+00> : vector<8x32xf32>
    %24 = tpu.matmul %21, %23, %cst_14 {dimension_numbers = #tpu.dot_dimension_numbers<[1], [0], [0], [1], [0, 0, 1, 1], [], []>} : vector<8x128xf32>, vector<128x32xf32>, vector<8x32xf32> -> vector<8x32xf32>
    %25 = arith.addf %22, %24 : vector<8x32xf32>
    %c0_15 = arith.constant 0 : index
    %c0_16 = arith.constant 0 : index
    %26 = vector.load %arg18[%c0_15, %c0_16] : memref<8x32xf32, #tpu.memory_space<vmem>>, vector<8x32xf32>
    tpu.vector_store %arg18[%c0_15, %c0_16], %25 {strides = array<i32>} : memref<8x32xf32, #tpu.memory_space<vmem>>, vector<8x32xf32>,
    %c0_i32_17 = arith.constant 0 : i32
    %27 = arith.cmpi eq, %arg2, %c0_i32_17 : i32
    %28 = arith.extui %27 : i1 to i32
    %c0_i32_18 = arith.constant 0 : i32
    %29 = arith.cmpi ne, %28, %c0_i32_18 : i32
    scf.if %29 {
      %c0_19 = arith.constant 0 : index
      %c0_20 = arith.constant 0 : index
      %30 = vector.load %arg18[%c0_19, %c0_20] : memref<8x32xf32, #tpu.memory_space<vmem>>, vector<8x32xf32>
      %c0_21 = arith.constant 0 : index
      %c0_22 = arith.constant 0 : index
      %31 = vector.load %arg14[%c0_21, %c0_22] : memref<1x32xf32, #tpu.memory_space<vmem>>, vector<1x32xf32>
      %32 = vector.broadcast %31 : vector<1x32xf32> to vector<8x32xf32>
      %33 = arith.addf %30, %32 : vector<8x32xf32>
      %c0_23 = arith.constant 0 : index
      %c0_24 = arith.constant 0 : index
      %34 = vector.load %arg16[%c0_23, %c0_24] : memref<8x32xf32, #tpu.memory_space<vmem>>, vector<8x32xf32>
      %c0_25 = arith.constant 0 : index
      %c0_26 = arith.constant 0 : index
      %c0_27 = arith.constant 0 : index
      %35 = vector.load %arg8[%c0_25, %c0_26, %c0_27] : memref<1x1x32xf32, #tpu.memory_space<vmem>>, vector<1x1x32xf32>
      %36 = vector.shape_cast %35 : vector<1x1x32xf32> to vector<1x32xf32>
      %37 = vector.broadcast %36 : vector<1x32xf32> to vector<8x32xf32>
      %38 = arith.mulf %37, %33 : vector<8x32xf32>
      %39 = arith.addf %34, %38 : vector<8x32xf32>
      %c0_28 = arith.constant 0 : index
      %c0_29 = arith.constant 0 : index
      %c0_30 = arith.constant 0 : index
      %40 = vector.load %arg15[%c0_28, %c0_29, %c0_30] : memref<1x8x32xf32, #tpu.memory_space<vmem>>, vector<1x8x32xf32>
      %41 = vector.shape_cast %40 : vector<1x8x32xf32> to vector<8x32xf32>
      %42 = vector.shape_cast %39 : vector<8x32xf32> to vector<1x8x32xf32>
      tpu.vector_store %arg15[%c0_28, %c0_29, %c0_30], %42 {strides = array<i32>} : memref<1x8x32xf32, #tpu.memory_space<vmem>>, vector<1x8x32xf32>,
    } else {
    }
    return
  }
  func.func @transform_0(%arg0: i32, %arg1: i32, %arg2: i32) -> (i32, i32, i32) {
    %c0_i32 = arith.constant 0 : i32
    %c0_i32_0 = arith.constant 0 : i32
    return %arg0, %arg1, %c0_i32 : i32, i32, i32
  }
  func.func @transform_1(%arg0: i32, %arg1: i32, %arg2: i32) -> (i32, i32, i32) {
    %c0_i32 = arith.constant 0 : i32
    %c0_i32_0 = arith.constant 0 : i32
    return %arg0, %arg1, %c0_i32 : i32, i32, i32
  }
  func.func @transform_2(%arg0: i32, %arg1: i32, %arg2: i32) -> (i32, i32, i32) {
    %c0_i32 = arith.constant 0 : i32
    %c0_i32_0 = arith.constant 0 : i32
    %c0_i32_1 = arith.constant 0 : i32
    return %arg0, %c0_i32, %c0_i32_0 : i32, i32, i32
  }
  func.func @transform_3(%arg0: i32, %arg1: i32, %arg2: i32) -> (i32, i32, i32) {
    %c0_i32 = arith.constant 0 : i32
    %c0_i32_0 = arith.constant 0 : i32
    %c0_i32_1 = arith.constant 0 : i32
    return %arg0, %c0_i32, %c0_i32_0 : i32, i32, i32
  }
  func.func @transform_4(%arg0: i32, %arg1: i32, %arg2: i32) -> (i32, i32, i32) {
    %c0_i32 = arith.constant 0 : i32
    %c0_i32_0 = arith.constant 0 : i32
    %c0_i32_1 = arith.constant 0 : i32
    return %arg0, %c0_i32, %c0_i32_0 : i32, i32, i32
  }
  func.func @transform_5(%arg0: i32, %arg1: i32, %arg2: i32) -> (i32, i32, i32) {
    %c0_i32 = arith.constant 0 : i32
    %c0_i32_0 = arith.constant 0 : i32
    %c0_i32_1 = arith.constant 0 : i32
    return %arg0, %c0_i32, %c0_i32_0 : i32, i32, i32
  }
  func.func @transform_6(%arg0: i32, %arg1: i32, %arg2: i32) -> (i32, i32) {
    %c0_i32 = arith.constant 0 : i32
    %c0_i32_0 = arith.constant 0 : i32
    %c0_i32_1 = arith.constant 0 : i32
    return %c0_i32, %c0_i32_0 : i32, i32
  }
  func.func @transform_7(%arg0: i32, %arg1: i32, %arg2: i32) -> (i32, i32) {
    %c0_i32 = arith.constant 0 : i32
    %c0_i32_0 = arith.constant 0 : i32
    %c0_i32_1 = arith.constant 0 : i32
    return %c0_i32, %c0_i32_0 : i32, i32
  }
  func.func @transform_8(%arg0: i32, %arg1: i32, %arg2: i32) -> (i32, i32) {
    %c0_i32 = arith.constant 0 : i32
    %c0_i32_0 = arith.constant 0 : i32
    return %c0_i32, %arg2 : i32, i32
  }
  func.func @transform_9(%arg0: i32, %arg1: i32, %arg2: i32) -> (i32, i32) {
    %c0_i32 = arith.constant 0 : i32
    %c0_i32_0 = arith.constant 0 : i32
    return %c0_i32, %arg2 : i32, i32
  }
  func.func @transform_10(%arg0: i32, %arg1: i32, %arg2: i32) -> (i32, i32) {
    %c0_i32 = arith.constant 0 : i32
    %c0_i32_0 = arith.constant 0 : i32
    return %arg2, %c0_i32 : i32, i32
  }
  func.func @transform_11(%arg0: i32, %arg1: i32, %arg2: i32) -> (i32, i32) {
    %c0_i32 = arith.constant 0 : i32
    %c0_i32_0 = arith.constant 0 : i32
    %c0_i32_1 = arith.constant 0 : i32
    return %c0_i32, %c0_i32_0 : i32, i32
  }
  func.func @transform_12(%arg0: i32, %arg1: i32, %arg2: i32) -> (i32, i32, i32) {
    %c0_i32 = arith.constant 0 : i32
    %c0_i32_0 = arith.constant 0 : i32
    return %arg0, %arg1, %c0_i32 : i32, i32, i32
  }
}

</mosaic_0001>

<bundles_post_ra>
// kernel: dit_block.3
= control target key start
LH: loop header
LB: loop body
LE: loop exit
PB: predicated region body
PF: predicated region fallthrough
CT: control target
= control target key end

     0   :  { %s610_s18 = smov 0   ;;  %s612_s19 = smov 0   ;;  %s676_s0 = inlined_call_operand.vmem [shape: f32[2,8,32], index: 0, kind: input, shape index: {}]   ;;  %s677_s1 = inlined_call_operand.vmem [shape: f32[2,1,32], index: 1, kind: input, shape index: {}]   ;;  %s678_s2 = inlined_call_operand.vmem [shape: f32[2,1,32], index: 2, kind: input, shape index: {}]   ;;  %s679_s3 = inlined_call_operand.vmem [shape: f32[32,96], index: 3, kind: input, shape index: {}]   ;;  %s680_s4 = inlined_call_operand.vmem [shape: f32[1,96], index: 4, kind: input, shape index: {}]   ;;  %s681_s5 = inlined_call_operand.vmem [shape: f32[2,8,96], index: 5, kind: output, shape index: {}]  }
   0x1   :  { %s614_s20 = smov 0  }
   0x2 LB: > { %s27_s21 = sadd.s32 1, %s571_s19  ;;  %p494_p0 = scmp.ge.s32.totalorder %s575_s20, 1  ;;  %s575_s20 = sphi %s614_s20, %s15_s20   ;;  %s571_s19 = sphi %s612_s19, %s683_s19   ;;  %s567_s18 = sphi %s610_s18, %s682_s18  }
   0x3   : > { %p29_p1 = scmp.ge.s32.totalorder %s27_s21, 2  ;;  %p221_p2 = scmp.lt.s32.totalorder %s575_s20, 3 }
   0x5   : > { %s685_s21 = smov (%p29_p1, %s27_s21), 0  ;;  %p222_p3 = pnand %p494_p0, %p221_p2 }
   0x6   : > { %p259_p4 = scmp.lt.s32.totalorder (!%p222_p3), %s567_s18, 1  ;;  %vm280_vm0 = vcmask (!%p222_p3), 261120   ;;  %v312_v7 = vld [vmem:[%s679_s3] sm:$0xff] (!%p222_p3)  ;;  %v313_v8 = vld [vmem:[%s679_s3 + $0x8] sm:$0xff] (!%p222_p3)  ;;  %v314_v9 = vld [vmem:[%s679_s3 + $0x10] sm:$0xff] (!%p222_p3)  ;;  %v577_v10 = vmov (!%p222_p3), 0.0|0.0   ;;  %v298_v17 = vlaneseq (!%p222_p3) }
   0x7   : > { %225 = sbr.rel (%p222_p3) target bundleno = 546 (0x222), region = 40  ;;  %518 = vmatprep.subr.bf16.mxu0 (!%p222_p3), %v577_v10  ;;  %v519_v11 = vpack.c.bf16 (!%p222_p3), %v313_v8, %v312_v7  ;;  %v315_v12 = vld [vmem:[%s679_s3 + $0x18] sm:$0xff] (!%p222_p3)  ;;  %vm578_vm1 = vmmov (!%p222_p3), 0   ;;  %v579_v13 = vmov (!%p222_p3), 0.0   ;;  %v498_v29 = vld [vmem:[%s680_s4] ss:$0 sm:$0xff] (!%p222_p3) }
   0x8   : > { %515 = vmatprep.mubr.msk.f32.mxu0 (!%p222_p3), %vm578_vm1, %v579_v13  ;;  %v522_v14 = vpack.c.bf16 (!%p222_p3), %v315_v12, %v314_v9  ;;  %v299_v19 = vshrl.u32 (!%p222_p3), %v298_v17, 7  ;;  %vm396_vm2 = vcmask (!%p222_p3), 785408  }
   0x9   : > { %520 = vmatpush3.bf16.msra.mxu0 (!%p222_p3), %v519_v11 }
   0xa   : > { %521 = vmatprep.subr.bf16.mxu0 (!%p222_p3), %v577_v10  ;;  %v300_v22 = vsub.s32 (!%p222_p3), 0, %v299_v19 }
   0xd   : > { %523 = vmatpush3.bf16.msra.mxu0 (!%p222_p3), %v522_v14 }
   0xe   : > { %s687_s18 = smov (!%p259_p4, %s567_s18), 1 }
   0xf   : > { %s495_s22 = sshll.u32 %s687_s18, 3  ;;  %s271_s11 = scalar_lea.vmem %s678_s2, %s687_s18 }
  0x10   : > { %s265_s25 = scalar_lea.vmem %s676_s0, %s495_s22  ;;  %v295_v20 = vld [vmem:[%s271_s11] sm:$0x1]  ;;  %s268_s14 = scalar_lea.vmem %s677_s1, %s687_s18 }
  0x11   : > { %v279_v0 = vld [vmem:[%s265_s25] sm:$0xff]  ;;  %v296_v21 = vadd.f32 1.0, %v295_v20  ;;  %s278_s24 = scalar_lea.vmem %s681_s5, %s495_s22 }
  0x12   : > { %v281_v1 = vsel %vm280_vm0, %v279_v0, 0.0  ;;  %v497_v26 = vld [vmem:[%s268_s14] ss:$0 sm:$0xff] }
  0x13   : > { %282 = vadd.xlane.f32.xlu0 %v281_v1  ;;  %v301_v23 = vrot.slane %v296_v21, %v300_v22 }
  0xa0   : > { %v283_v2 = vpop.xlane.xlu0 %282 }
  0xa1   : > { %v285_v3 = vmul.f32 0.03125, %v283_v2 }
  0xa3   : > { %v286_v4 = vsub.f32 %v279_v0, %v285_v3 }
  0xa5   : > { %v287_v5 = vmul.f32 %v286_v4, %v286_v4 }
  0xa7   : > { %v288_v6 = vsel %vm280_vm0, %v287_v5, 0.0 }
  0xa8   : > { %289 = vadd.xlane.f32.xlu0 %v288_v6 }
 0x135   : > { %v290_v15 = vpop.xlane.xlu0 %289 }
 0x136   : > { %v291_v16 = vmul.f32 0.03125, %v290_v15 }
 0x138   : > { %v292_v18 = vadd.f32 1e-06, %v291_v16 }
 0x13a   : > { %551 = vrsqrt.f32 %v292_v18 }
 0x144   : > { %v552_v24 = vpop.eup %551 }
 0x145   : > { %v294_v25 = vmul.f32 %v552_v24, %v286_v4 }
 0x147   : > { %v303_v27 = vmul.f32 %v301_v23, %v294_v25 }
 0x149   : > { %v311_v28 = vadd.f32 %v497_v26, %v303_v27 }
 0x14b   : > { %516 = vmatmul.mubr.msk.f32.vlgmr.msra.gmra.mrb[0].mxu0 %vm280_vm0, %v311_v28 }
 0x21e   : > { %v392_v30 = vpop.f32.mrb[0].mxu0 }
 0x21f   : > { %v393_v31 = vadd.f32 %v498_v29, %v392_v30  ;;  %v517_v32 = vpop.f32.mrb[1].mxu0 }
 0x221   : > { %397 = vst.msk [vmem:[%s278_s24] sm:$0xff] %vm396_vm2, %v393_v31 }
 0x222 PF: > { %s15_s20 = sadd.s32 1, %s575_s20   ;;  %s682_s18 = smov %s571_s19 }
 0x223   : > { %p12_p5 = scmp.ge.s32.totalorder %s15_s20, 4   ;;  %s683_s19 = smov %s685_s21 }
 0x225   :  { %14 = sbr.rel (!%p12_p5) target bundleno = 2 (0x2), region = 76 }

// kernel: dit_block.4
= control target key start
LH: loop header
LB: loop body
LE: loop exit
PB: predicated region body
PF: predicated region fallthrough
CT: control target
= control target key end

     0   :  { %s689_s12 = smov 0   ;;  %s691_s13 = smov 0   ;;  %s746_s0 = inlined_call_operand.vmem [shape: f32[8,8,8], index: 0, kind: input, shape index: {}]   ;;  %s747_s1 = inlined_call_operand.vmem [shape: f32[8,8,8], index: 1, kind: input, shape index: {}]   ;;  %s748_s2 = inlined_call_operand.vmem [shape: f32[8,8,8], index: 2, kind: input, shape index: {}]   ;;  %s749_s3 = inlined_call_operand.vmem [shape: f32[8,8,8], index: 3, kind: output, shape index: {}]  }
   0x1   :  { %s693_s14 = smov 0  }
   0x2 LB: > { %s32_s15 = sadd.s32 1, %s659_s13  ;;  %p581_p0 = scmp.ge.s32.totalorder %s663_s14, 1  ;;  %s663_s14 = sphi %s693_s14, %s13_s14   ;;  %s659_s13 = sphi %s691_s13, %s751_s13   ;;  %s655_s12 = sphi %s689_s12, %s750_s12  }
   0x3   : > { %p34_p1 = scmp.ge.s32.totalorder %s32_s15, 8  ;;  %p190_p2 = scmp.lt.s32.totalorder %s663_s14, 9 }
   0x5   : > { %s753_s15 = smov (%p34_p1, %s32_s15), 0  ;;  %p191_p3 = pnand %p581_p0, %p190_p2 }
   0x6   : > { %p232_p4 = scmp.lt.s32.totalorder (!%p191_p3), %s655_s12, 7  ;;  %vm267_vm0 = vcmask (!%p191_p3), 64512   ;;  %v665_v0 = vmov (!%p191_p3), 0.0   ;;  %vm666_vm1 = vmmov (!%p191_p3), 0   ;;  %vm264_vm2 = vcmask (!%p191_p3), 7168  }
   0x7   : > { %194 = sbr.rel (%p191_p3) target bundleno = 818 (0x332), region = 32  ;;  %595 = vmatprep.subr.mxu0 (!%p191_p3), %v665_v0  ;;  %268 = vst.msk [vmem:[#allocation4] sm:$0xff] (!%p191_p3), %vm267_vm0, %v665_v0  ;;  %597 = vmatprep.mubr.msk.f32.mxu0 (!%p191_p3), %vm666_vm1, %v665_v0  ;;  %v667_v3 = vmov (!%p191_p3), -inf   ;;  %v668_v8 = vmov (!%p191_p3), 0  }
   0x8   : > { %600 = vmatprep.subr.mxu1 (!%p191_p3), %v665_v0  ;;  %602 = vmatprep.mubr.msk.f32.mxu1 (!%p191_p3), %vm666_vm1, %v665_v0  ;;  %265 = vst.msk [vmem:[#allocation2] sm:$0xff] (!%p191_p3), %vm264_vm2, %v667_v3  ;;  %266 = vst.msk [vmem:[#allocation3] sm:$0xff] (!%p191_p3), %vm264_vm2, %v665_v0 }
   0x9   : > { %633 = vset.pattern.permute.xlu0 (!%p191_p3), %v668_v8  ;;  %634 = vset.pattern.permute.xlu1 (!%p191_p3), %v668_v8 }
   0xe   : > { %s755_s12 = smov (!%p232_p4, %s655_s12), 7  ;;  %v373_v27 = vld [vmem:[#allocation4] sm:$0xff] }
   0xf   : > { %s708_s16 = sshll.u32 %s755_s12, 3  ;;  %v349_v9 = vld [vmem:[#allocation2] sm:$0xff]  ;;  %v365_v21 = vld [vmem:[#allocation3] sm:$0xff] }
  0x10   : > { %s245_s19 = scalar_lea.vmem %s747_s1, %s708_s16  ;;  %s238_s22 = scalar_lea.vmem %s746_s0, %s708_s16 }
  0x11   : > { %v270_v1 = vld [vmem:[%s245_s19] sm:$0xff]  ;;  %s252_s25 = scalar_lea.vmem %s748_s2, %s708_s16  ;;  %s259_s28 = scalar_lea.vmem %s749_s3, %s708_s16 }
  0x12   : > { %596 = vmatpush3.xpose.msk.msra.mxu0 %vm267_vm0, %v270_v1  ;;  %v269_v2 = vld [vmem:[%s238_s22] sm:$0xff] }
  0x13   : > { %v380_v13 = vld [vmem:[%s252_s25] sm:$0xff] }
  0x14   : > { %601 = vmatpush3.msra.mxu1 %v380_v13 }
  0x15   : > { %598 = vmatmul.mubr.msk.f32.vlgmr.msra.gmra.mrb[0].mxu0 %vm267_vm0, %v269_v2 }
  0xe8   : > { %v344_v4 = vpop.f32.mrb[0].mxu0 }
  0xe9   : > { %v348_v5 = vmul.f32 0.35355338, %v344_v4  ;;  %v599_v6 = vpop.f32.mrb[1].mxu0 }
  0xeb   : > { %v350_v7 = vsel %vm267_vm0, %v348_v5, -inf }
  0xec   : > { %351 = vmax.xlane.f32.xlu0 %v350_v7 }
 0x179   : > { %v352_v10 = vpop.xlane.xlu0 %351 }
 0x17a   : > { %v353_v11 = vmax.f32 %v349_v9, %v352_v10 }
 0x17c   : > { %v354_v12 = vsub.f32 %v349_v9, %v353_v11  ;;  %456 = vst.msk [vmem:[#allocation2] sm:$0xff] %vm264_vm2, %v353_v11  ;;  %359 = vperm.xlu0 %633, %v353_v11  }
 0x17e   : > { %v355_v19 = vmul.f32 1.442695, %v354_v12 }
 0x1fb   : > { %v360_v14 = vpop.permute.xlu0 %359 }
 0x1fc   : > { %v362_v15 = vsub.f32 %v348_v5, %v360_v14 }
 0x1fe   : > { %v363_v16 = vmul.f32 1.442695, %v362_v15 }
 0x200   : > { %635 = vpow2.f32 %v363_v16 }
 0x201   : > { %637 = vpow2.f32 %v355_v19 }
 0x20a   : > { %v636_v17 = vpop.eup %635 }
 0x20b   : > { %603 = vmatmul.mubr.msk.f32.vlgmr.msra.gmra.mrb[0].mxu1 %vm267_vm0, %v636_v17  ;;  %v367_v18 = vsel %vm267_vm0, %v636_v17, 0.0  ;;  %v638_v20 = vpop.eup %637 }
 0x20c   : > { %368 = vadd.xlane.f32.xlu1 %v367_v18  ;;  %v366_v22 = vmul.f32 %v638_v20, %v365_v21 }
 0x21d   : > { %376 = vperm.xlu1 %634, %v638_v20  }
 0x299   : > { %v369_v23 = vpop.xlane.xlu1 %368 }
 0x29a   : > { %v370_v24 = vadd.f32 %v369_v23, %v366_v22 }
 0x29c   : > { %372 = vst.msk [vmem:[#allocation3] sm:$0xff] %vm264_vm2, %v370_v24 }
 0x29d   : > { %v377_v28 = vpop.permute.xlu1 %376 }
 0x29e   : > { %v379_v29 = vmul.f32 %v377_v28, %v373_v27 }
 0x2a3   : > { %v460_v25 = vld [vmem:[#allocation3] sm:$0xff] }
 0x2a4   : > { %639 = vrcp.f32 %v460_v25 }
 0x2ae   : > { %v640_v26 = vpop.eup %639 }
 0x2af   : > { %465 = vperm.xlu1 %634, %v640_v26  }
 0x2de   : > { %v450_v30 = vpop.f32.mrb[0].mxu1 }
 0x2df   : > { %v454_v31 = vadd.f32 %v450_v30, %v379_v29  ;;  %v604_v32 = vpop.f32.mrb[1].mxu1 }
 0x2e1   : > { %455 = vst.msk [vmem:[#allocation4] sm:$0xff] %vm267_vm0, %v454_v31 }
 0x2e8   : > { %v462_v33 = vld [vmem:[#allocation4] sm:$0xff] }
 0x32e   : > { %v466_v34 = vpop.permute.xlu1 %465 }
 0x32f   : > { %v468_v35 = vmul.f32 %v466_v34, %v462_v33 }
 0x331   : > { %469 = vst.msk [vmem:[%s259_s28] sm:$0xff] %vm267_vm0, %v468_v35 }
 0x332 PF: > { %s13_s14 = sadd.s32 1, %s663_s14   ;;  %s750_s12 = smov %s659_s13 }
 0x333   : > { %p10_p5 = scmp.ge.s32.totalorder %s13_s14, 10   ;;  %s751_s13 = smov %s753_s15 }
 0x335   :  { %12 = sbr.rel (!%p10_p5) target bundleno = 2 (0x2), region = 76 }

// kernel: dit_block.5
= control target key start
LH: loop header
LB: loop body
LE: loop exit
PB: predicated region body
PF: predicated region fallthrough
CT: control target
= control target key end

     0   :  { %s1691_s0 = inlined_call_operand.vmem [shape: f32[2,8,32], index: 0, kind: input, shape index: {}]   ;;  %s1692_s1 = inlined_call_operand.vmem [shape: f32[2,8,32], index: 1, kind: input, shape index: {}]   ;;  %s1693_s2 = inlined_call_operand.vmem [shape: f32[2,1,32], index: 2, kind: input, shape index: {}]   ;;  %s1694_s3 = inlined_call_operand.vmem [shape: f32[2,1,32], index: 3, kind: input, shape index: {}]   ;;  %s1695_s4 = inlined_call_operand.vmem [shape: f32[2,1,32], index: 4, kind: input, shape index: {}]   ;;  %s1696_s5 = inlined_call_operand.vmem [shape: f32[2,1,32], index: 5, kind: input, shape index: {}]   ;;  %s1697_s6 = inlined_call_operand.vmem [shape: f32[32,32], index: 6, kind: input, shape index: {}]   ;;  %s1698_s7 = inlined_call_operand.vmem [shape: f32[1,32], index: 7, kind: input, shape index: {}]   ;;  %s1699_s8 = inlined_call_operand.vmem [shape: f32[32,128], index: 8, kind: input, shape index: {}]   ;;  %s1700_s9 = inlined_call_operand.vmem [shape: f32[1,128], index: 9, kind: input, shape index: {}]   ;;  %s1701_s10 = inlined_call_operand.vmem [shape: f32[128,32], index: 10, kind: input, shape index: {}]   ;;  %s1702_s11 = inlined_call_operand.vmem [shape: f32[1,32], index: 11, kind: input, shape index: {}]   ;;  %s1703_s12 = inlined_call_operand.hbm [shape: f32[2,8,32], index: 12, kind: output, shape index: {}]  }
   0x1   :  { %1706 = sst [smem:[#allocation11_spill]] %s1691_s0 }
   0x2   :  { %1707 = sst [smem:[#allocation12_spill]] %s1692_s1 }
   0x3   :  { %1708 = sst [smem:[#allocation13_spill]] %s1697_s6 }
   0x4   :  { %17 = vsyncpa [#allocation6], 0 }
   0x5   :  { %19 = vsyncpa [#allocation6 + $0x1], 0  ;;  %s1455_s21 = smov 0   ;;  %s1457_s22 = smov 0  }
   0x6   :  { %s1459_s23 = smov 0   ;;  %s1461_s24 = smov 0  }
   0x7   :  { %s1463_s25 = smov 0   ;;  %s1465_s26 = smov 0  }
   0x8 LB: > { %1709 = sst [smem:[#allocation8_spill]] %s1380_s25  ;;  %s1101_s27 = sadd.s32 4294967295, %s1384_s26   ;;  %s1384_s26 = sphi %s1465_s26, %s25_s26   ;;  %s1380_s25 = sphi %s1463_s25, %s1719_s25   ;;  %s1376_s24 = sphi %s1461_s24, %s1718_s24   ;;  %s1372_s23 = sphi %s1459_s23, %s1722_s23   ;;  %s1368_s22 = sphi %s1457_s22, %s1721_s22   ;;  %s1364_s21 = sphi %s1455_s21, %s1720_s21  }
   0x9   : > { %s1102_s28 = sadd.s32 4294967294, %s1384_s26   ;;  %s44_s29 = sadd.s32 1, %s1380_s25 }
   0xa   : > { %s354_s30 = sadd.s32 1, %s1372_s23  ;;  %p46_p0 = scmp.ge.s32.totalorder %s44_s29, 2 }
   0xb   : > { %p364_p1 = scmp.ne.s32.totalorder %s1372_s23, %s1368_s22  ;;  %p365_p2 = scmp.eq.s32.totalorder %s1101_s27, 1 }
   0xc   : > { %p370_p3 = scmp.ne.s32.totalorder %s1368_s22, %s1364_s21  ;;  %s1724_s29 = smov (%p46_p0, %s44_s29), 0 }
   0xd   : > { %1710 = sst [smem:[#allocation9_spill]] %s1724_s29  ;;  %p1495_p4 = por %p365_p2, %p364_p1 }
   0xe   : > { %p371_p5 = scmp.eq.s32.totalorder %s1102_s28, 1  ;;  %s349_s14 = ssub.s32 %s1380_s25, %s1724_s29 }
   0xf   : > { %p1108_p6 = scmp.ge.s32.totalorder %s1384_s26, 1  ;;  %p352_p7 = scmp.eq.s32.totalorder %s349_s14, 0 }
  0x10   : > { %p1502_p8 = por %p371_p5, %p370_p3  ;;  %p464_p9 = scmp.lt.s32.totalorder %s1384_s26, 3 }
  0x11   : > { %s1508_s16 = scalar_select %p352_p7, %s1372_s23, %s354_s30  }
  0x12   : > { %p465_p10 = pnand %p1108_p6, %p464_p9 }
  0x13   : > { %1713 = sst [smem:[#allocation10_spill]] %s1508_s16  ;;  %s1714_s6 = sld [smem:[#allocation13_spill]] (!%p465_p10)  ;;  %v1386_v3 = vmov (!%p465_p10), 0.0|0.0   ;;  %vm594_vm0 = vcmask (!%p465_p10), 261120   ;;  %vm1387_vm1 = vmmov (!%p465_p10), 0   ;;  %v1388_v6 = vmov (!%p465_p10), 0.0  }
  0x14   : > { %468 = sbr.rel (%p465_p10) target bundleno = 1055 (0x41f), region = 68  ;;  %1208 = vmatprep.subr.bf16.mxu1 (!%p465_p10), %v1386_v3  ;;  %p539_p11 = scmp.lt.s32.totalorder (!%p465_p10), %s1376_s24, 1  ;;  %1220 = vmatprep.subr.bf16.mxu0 (!%p465_p10), %v1386_v3  ;;  %711 = vst.msk [vmem:[#allocation4] sm:$0xff] (!%p465_p10), %vm594_vm0, %v1388_v6  ;;  %v1112_v9 = vld [vmem:[%s1698_s7] ss:$0 sm:$0xff] (!%p465_p10)  ;;  %v714_v24 = vld [vmem:[%s1699_s8 + $0x8] sm:$0xff] (!%p465_p10)  ;;  %v696_v34 = vlaneseq (!%p465_p10) }
  0x15   : > { %1159 = vmatprep.mubr.msk.f32.mxu1 (!%p465_p10), %vm1387_vm1, %v1388_v6  ;;  %1205 = vmatprep.mubr.msk.f32.mxu0 (!%p465_p10), %vm1387_vm1, %v1388_v6  ;;  %s1715_s1 = sld [smem:[#allocation12_spill]] (!%p465_p10)  ;;  %s1716_s0 = sld [smem:[#allocation11_spill]] (!%p465_p10)  ;;  %v713_v23 = vld [vmem:[%s1699_s8] sm:$0xff] (!%p465_p10)  ;;  %v715_v26 = vld [vmem:[%s1699_s8 + $0x10] sm:$0xff] (!%p465_p10)  ;;  %v716_v27 = vld [vmem:[%s1699_s8 + $0x18] sm:$0xff] (!%p465_p10) }
  0x16   : > { %v1215_v25 = vpack.c.bf16 (!%p465_p10), %v714_v24, %v713_v23  ;;  %v1218_v28 = vpack.c.bf16 (!%p465_p10), %v716_v27, %v715_v26  ;;  %v808_v29 = vld [vmem:[%s1701_s10] sm:$0xff] (!%p465_p10)  ;;  %v809_v30 = vld [vmem:[%s1701_s10 + $0x8] sm:$0xff] (!%p465_p10)  ;;  %v697_v36 = vshrl.u32 (!%p465_p10), %v696_v34, 7  ;;  %v810_v47 = vld [vmem:[%s1701_s10 + $0x10] sm:$0xff] (!%p465_p10) }
  0x17   : > { %v1221_v31 = vpack.c.bf16 (!%p465_p10), %v809_v30, %v808_v29  ;;  %v811_v48 = vld [vmem:[%s1701_s10 + $0x18] sm:$0xff] (!%p465_p10)  ;;  %v812_v50 = vld [vmem:[%s1701_s10 + $0x20] sm:$0xff] (!%p465_p10)  ;;  %v813_v51 = vld [vmem:[%s1701_s10 + $0x28] sm:$0xff] (!%p465_p10) }
  0x18   : > { %v698_v39 = vsub.s32 (!%p465_p10), 0, %v697_v36  ;;  %v1224_v49 = vpack.c.bf16 (!%p465_p10), %v811_v48, %v810_v47  ;;  %v1227_v52 = vpack.c.bf16 (!%p465_p10), %v813_v51, %v812_v50  ;;  %v814_v53 = vld [vmem:[%s1701_s10 + $0x30] sm:$0xff] (!%p465_p10)  ;;  %v815_v54 = vld [vmem:[%s1701_s10 + $0x38] sm:$0xff] (!%p465_p10)  ;;  %v816_v56 = vld [vmem:[%s1701_s10 + $0x40] sm:$0xff] (!%p465_p10) }
  0x19   : > { %v583_v0 = vld [vmem:[%s1714_s6] sm:$0xff] (!%p465_p10)  ;;  %v584_v1 = vld [vmem:[%s1714_s6 + $0x8] sm:$0xff] (!%p465_p10)  ;;  %v585_v2 = vld [vmem:[%s1714_s6 + $0x10] sm:$0xff] (!%p465_p10)  ;;  %1222 = vmatpush3.bf16.msra.mxu0 (!%p465_p10), %v1221_v31  ;;  %v1230_v55 = vpack.c.bf16 (!%p465_p10), %v815_v54, %v814_v53 }
  0x1a   : > { %v1209_v4 = vpack.c.bf16 (!%p465_p10), %v584_v1, %v583_v0  ;;  %v586_v5 = vld [vmem:[%s1714_s6 + $0x18] sm:$0xff] (!%p465_p10)  ;;  %1223 = vmatprep.subr.bf16.mxu0 (!%p465_p10), %v1386_v3  ;;  %v817_v57 = vld [vmem:[%s1701_s10 + $0x48] sm:$0xff] (!%p465_p10)  ;;  %v818_v59 = vld [vmem:[%s1701_s10 + $0x50] sm:$0xff] (!%p465_p10)  ;;  %s1121_s6 = sshll.u32 (!%p465_p10), %s1376_s24, 7 }
  0x1b   : > { %v1212_v7 = vpack.c.bf16 %v586_v5, %v585_v2  ;;  %s1527_s17 = scalar_select %p539_p11, %s1376_s24, 1  ;;  %v1233_v58 = vpack.c.bf16 %v817_v57, %v816_v56  ;;  %v819_v60 = vld [vmem:[%s1701_s10 + $0x58] sm:$0xff]  ;;  %v820_v62 = vld [vmem:[%s1701_s10 + $0x60] sm:$0xff]  ;;  %v821_v63 = vld [vmem:[%s1701_s10 + $0x68] sm:$0xff] }
  0x1c   : > { %1210 = vmatpush3.bf16.msra.mxu1 %v1209_v4  ;;  %v1236_v61 = vpack.c.bf16 %v819_v60, %v818_v59  ;;  %v1239_v0 = vpack.c.bf16 %v821_v63, %v820_v62  ;;  %v822_v1 = vld [vmem:[%s1701_s10 + $0x70] sm:$0xff]  ;;  %v823_v2 = vld [vmem:[%s1701_s10 + $0x78] sm:$0xff]  ;;  %v1116_v5 = vld [vmem:[%s1700_s9] ss:$0 sm:$0xff]  ;;  %s1389_s24 = smov [#allocation5]  }
  0x1d   : > { %1211 = vmatprep.subr.bf16.mxu1 %v1386_v3  ;;  %s1110_s18 = sshll.u32 %s1527_s17, 3  ;;  %s555_s14 = scalar_lea.vmem %s1693_s2, %s1527_s17  ;;  %1225 = vmatpush3.bf16.msra.mxu0 %v1224_v49  ;;  %v1242_v4 = vpack.c.bf16 %v823_v2, %v822_v1 }
  0x1e   : > { %s552_s27 = scalar_lea.vmem %s1715_s1, %s1110_s18  ;;  %s545_s19 = scalar_lea.vmem %s1716_s0, %s1110_s18  ;;  %v1114_v11 = vld [vmem:[%s555_s14] ss:$0 sm:$0xff]  ;;  %1226 = vmatprep.subr.bf16.mxu0 %v1386_v3 }
  0x1f   : > { %v582_v8 = vld [vmem:[%s552_s27] sm:$0xff]  ;;  %s561_s16 = scalar_lea.vmem %s1695_s4, %s1527_s17  ;;  %s558_s27 = scalar_lea.vmem %s1694_s3, %s1527_s17 }
  0x20   : > { %1213 = vmatpush3.bf16.msra.mxu1 %v1212_v7  ;;  %v668_v14 = vld [vmem:[%s545_s19] sm:$0xff]  ;;  %s536_s18 = sand.u32 1, %s1368_s22   ;;  %s564_s30 = scalar_lea.vmem %s1696_s5, %s1527_s17 }
  0x21   : > { %1214 = vmatprep.subr.bf16.mxu1 %v1386_v3  ;;  %v693_v37 = vld [vmem:[%s561_s16] sm:$0x1]  ;;  %1228 = vmatpush3.bf16.msra.mxu0 %v1227_v52  ;;  %s1109_s20 = sshll.u32 %s536_s18, 3  ;;  %s1643_s1 = scalar_lea.hbm %s1703_s12, %s1121_s6 }
  0x22   : > { %v694_v38 = vadd.f32 1.0, %v693_v37  ;;  %v1115_v43 = vld [vmem:[%s558_s27] ss:$0 sm:$0xff]  ;;  %1229 = vmatprep.subr.bf16.mxu0 %v1386_v3  ;;  %s538_s25 = scalar_lea.vmem [#allocation5], %s1109_s20  ;;  %s920_s17 = scalar_lea.sflag [#allocation6], %s536_s18 }
  0x23   : > { %1160 = vmatmul.mubr.msk.f32.vlgmr.msra.gmra.mrb[0].mxu1 %vm594_vm0, %v582_v8  ;;  %v1119_v23 = vld [vmem:[%s564_s30] ss:$0 sm:$0xff]  ;;  %s934_s29 = sshll.u32 %s538_s25, 4  ;;  %s1310_s20 = sshll.u32 %s1389_s24, 4  ;;  %s1645_s29 = int_to_ptr.vmem [resolvable:$true] %s934_s29  ;;  %s1311_s20 = int_to_ptr.vmem [resolvable:$false] %s1310_s20 }
  0x24   : > { %1170 = vmatprep.mubr.msk.f32.mxu1 %vm1387_vm1, %v1388_v6  ;;  %1216 = vmatpush3.bf16.msra.mxu1 %v1215_v25  ;;  %v699_v40 = vrot.slane %v694_v38, %v698_v39  ;;  %s1306_s27 = scalar_lea.vmem %s1645_s29, 128  ;;  %s1312_s28 = scalar_lea.vmem %s1311_s20, 256 }
  0x25   : > { %1217 = vmatprep.subr.bf16.mxu1 %v1386_v3  ;;  %1231 = vmatpush3.bf16.msra.mxu0 %v1230_v55  ;;  %p1307_p12 = scmp.ne.s32.totalorder %s1645_s29, %s1306_s27  ;;  %p1313_p1 = scmp.lt.s32.totalorder %s1645_s29, %s1311_s20 }
  0x26   : > { %1232 = vmatprep.subr.bf16.mxu0 %v1386_v3  ;;  %p1314_p2 = scmp.lt.s32.totalorder %s1312_s28, %s1306_s27 }
  0x27   : > { %p1308_p13 = pnand %p1307_p12, %p1495_p4 }
  0x28   : > { %1219 = vmatpush3.bf16.msra.mxu1 %v1218_v28  ;;  %p1315_p3 = por %p1314_p2, %p1313_p1 }
  0x29   : > { %1234 = vmatpush3.bf16.msra.mxu0 %v1233_v58  ;;  %p1309_p0 = pneg %p1308_p13 }
  0x2a   : > { %1235 = vmatprep.subr.bf16.mxu0 %v1386_v3 }
  0x2b   : > { %p1316_p5 = pnand %p1315_p3, %p1309_p0 }
  0x2d   : > { %1237 = vmatpush3.bf16.msra.mxu0 %v1236_v61 }
  0x2e   : > { %1238 = vmatprep.subr.bf16.mxu0 %v1386_v3 }
  0x31   : > { %1240 = vmatpush3.bf16.msra.mxu0 %v1239_v0 }
  0x32   : > { %1241 = vmatprep.subr.bf16.mxu0 %v1386_v3 }
  0x35   : > { %1243 = vmatpush3.bf16.msra.mxu0 %v1242_v4 }
  0xf6   : > { %v664_v10 = vpop.f32.mrb[0].mxu1 }
  0xf7   : > { %v665_v12 = vadd.f32 %v1112_v9, %v664_v10  ;;  %v1161_v13 = vpop.f32.mrb[1].mxu1 }
  0xf9   : > { %v676_v15 = vmul.f32 %v1114_v11, %v665_v12 }
  0xfb   : > { %v677_v16 = vadd.f32 %v676_v15, %v668_v14 }
  0xfd   : > { %v679_v17 = vsel %vm594_vm0, %v677_v16, 0.0  ;;  %678 = vst.msk [vmem:[#allocation2] sm:$0xff] %vm594_vm0, %v677_v16 }
  0xfe   : > { %680 = vadd.xlane.f32.xlu0 %v679_v17  ;;  %v807_v17 = vld [vmem:[#allocation4] sm:$0xff] }
 0x104   : > { %v908_v26 = vld [vmem:[#allocation2] sm:$0xff] }
 0x18b   : > { %v681_v18 = vpop.xlane.xlu0 %680 }
 0x18c   : > { %v683_v19 = vmul.f32 0.03125, %v681_v18 }
 0x18e   : > { %v684_v20 = vsub.f32 %v677_v16, %v683_v19 }
 0x190   : > { %v685_v21 = vmul.f32 %v684_v20, %v684_v20 }
 0x192   : > { %v686_v22 = vsel %vm594_vm0, %v685_v21, 0.0  ;;  %v1118_v21 = vld [vmem:[%s1702_s11] ss:$0 sm:$0xff] }
 0x193   : > { %687 = vadd.xlane.f32.xlu0 %v686_v22 }
 0x220   : > { %v688_v32 = vpop.xlane.xlu0 %687 }
 0x221   : > { %v689_v33 = vmul.f32 0.03125, %v688_v32 }
 0x223   : > { %v690_v35 = vadd.f32 1e-06, %v689_v33 }
 0x225   : > { %1302 = vrsqrt.f32 %v690_v35 }
 0x22f   : > { %v1303_v41 = vpop.eup %1302 }
 0x230   : > { %v692_v42 = vmul.f32 %v1303_v41, %v684_v20 }
 0x232   : > { %v701_v44 = vmul.f32 %v699_v40, %v692_v42 }
 0x234   : > { %v709_v45 = vadd.f32 %v1115_v43, %v701_v44 }
 0x236   : > { %710 = vst.msk [vmem:[#allocation3] sm:$0xff] %vm594_vm0, %v709_v45 }
 0x23d   : > { %v712_v46 = vld [vmem:[#allocation3] sm:$0xff] }
 0x23e   : > { %1171 = vmatmul.mubr.msk.f32.vlgmr.msra.gmra.mrb[2].mxu1 %vm594_vm0, %v712_v46 }
 0x311   : > { %v794_v6 = vpop.f32.mrb[2].mxu1 }
 0x312   : > { %v795_v7 = vadd.f32 %v1116_v5, %v794_v6  ;;  %v1172_v8 = vpop.f32.mrb[3].mxu1 }
 0x314   : > { %v799_v9 = vmul.f32 0.044715, %v795_v7  ;;  %v798_v15 = vmul.f32 0.5, %v795_v7 }
 0x316   : > { %v800_v10 = vmul.f32 %v799_v9, %v795_v7 }
 0x318   : > { %v801_v11 = vmul.f32 %v800_v10, %v795_v7 }
 0x31a   : > { %v802_v12 = vadd.f32 %v801_v11, %v795_v7 }
 0x31c   : > { %v803_v13 = vmul.f32 0.7978846, %v802_v12 }
 0x31e   : > { %1304 = vtanh.f32 %v803_v13 }
 0x328   : > { %v1305_v14 = vpop.eup %1304 }
 0x329   : > { %v805_v3 = vadd.f32 1.0, %v1305_v14 }
 0x32b   : > { %v806_v16 = vmul.f32 %v805_v3, %v798_v15 }
 0x32d   : > { %1206 = vmatmul.mubr.f32.vlgmr.msra.gmra.mrb[0].mxu0 %v806_v16 }
 0x400   : > { %v890_v18 = vpop.f32.mrb[0].mxu0 }
 0x401   : > { %v894_v19 = vadd.f32 %v890_v18, %v807_v17  ;;  %v1207_v20 = vpop.f32.mrb[1].mxu0 }
 0x403   : > { %895 = vst.msk [vmem:[#allocation4] sm:$0xff] %vm594_vm0, %v894_v19 }
 0x40a   : > { %v899_v22 = vld [vmem:[#allocation4] sm:$0xff] }
 0x40b   : > { %v907_v24 = vadd.f32 %v1118_v21, %v899_v22 }
 0x40d   : > { %v916_v25 = vmul.f32 %v1119_v23, %v907_v24 }
 0x40f   : > { %v917_v27 = vadd.f32 %v916_v25, %v908_v26 }
 0x411   : > { %918 = vst.msk [vmem:[%s538_s25] sm:$0xff] %vm594_vm0, %v917_v27 }
 0x412   : > { %1319 = shalt.err (!%p1316_p5)
}
 0x413   : > { %s1320_s0 = scalar_lea.hbm %s1643_s1, 128  ;;  %s1324_s14 = scalar_lea.hbm %s1703_s12, 256 }
 0x414   : > { %p1321_p6 = scmp.ne.s32.totalorder %s1643_s1, %s1320_s0  ;;  %p1325_p10 = scmp.lt.u32.totalorder %s1643_s1, %s1703_s12 }
 0x415   : > { %p1326_p11 = scmp.lt.u32.totalorder %s1324_s14, %s1320_s0  ;;  %p1328_p13 = scmp.lt.u32.totalorder %s1320_s0, %s1643_s1 }
 0x416   : > { %p1322_p7 = pnand %p1321_p6, %p1495_p4 }
 0x417   : > { %p1327_p12 = por %p1326_p11, %p1325_p10 }
 0x418   : > { %p1323_p9 = pneg %p1322_p7 }
 0x419   : > { %p1329_p0 = por %p1328_p13, %p1327_p12 }
 0x41b   : > { %p1330_p1 = pnand %p1329_p0, %p1323_p9 }
 0x41d   : > { %1333 = shalt.err (!%p1330_p1)
}
 0x41e   : > { %1244 = dma.vmem_to_hbm [thread:$0]  (%p1495_p4), %s1645_s29, 128, %s1643_s1, %s920_s17  }
 0x41f PF: > { %p1250_p2 = scmp.ge.s32.totalorder %s1384_s26, 2  ;;  %s946_s25 = sand.u32 1, %s1364_s21  }
 0x420   : > { %s947_s16 = scalar_lea.sflag [#allocation6], %s946_s25 }
 0x421   : > { %p1247_p3 = pnand %p1250_p2, %p1502_p8 }
 0x423   : > { %1359 = dma.done.wait (!%p1247_p3), %s947_s16, 128  }
 0x424   : > { %1361 = vsyncadd (!%p1247_p3), %s947_s16, 4294967168  ;;  %s25_s26 = sadd.s32 1, %s1384_s26   ;;  %s1717_s13 = sld [smem:[#allocation10_spill]] }
 0x425   : > { %p22_p5 = scmp.ge.s32.totalorder %s25_s26, 4   ;;  %s1718_s24 = sld [smem:[#allocation8_spill]] }
 0x426   : > { %s1719_s25 = sld [smem:[#allocation9_spill]]  ;;  %s1720_s21 = smov %s1368_s22 }
 0x427   : > { %s1721_s22 = smov %s1372_s23  ;;  %24 = sbr.rel (!%p22_p5) target bundleno = 8 (0x8), region = 135 }
 0x42a   : > { %s1722_s23 = smov %s1717_s13 }
 0x42e   :  { %952 = vsyncpa [#allocation6], 1 }
 0x42f   :  { %954 = vsyncpa [#allocation6 + $0x1], 1 }

</bundles_post_ra>
